<compile_context>
chip_gen: v7x
topology: tpu7x:2x2x1
jax: 0.10.0
libtpu: 0.0.40
codegen_flags: <defaults>
</compile_context>

<pallas_src>
import jax
import jax.numpy as jnp
from jax.experimental import pallas as pl
from jax.experimental.pallas import tpu as pltpu

LANE = 128          # lane-dense channel padding for kernel outputs / weights
MT = 512            # target output rows per grid tile (small vs any VMEM budget)
FC_OUT = 100


def _round_up(x, m):
    return (x + m - 1) // m * m


# ----------------------------------------------------------------------------
# Pallas kernels
# ----------------------------------------------------------------------------
def conv_relu_pool_kernel(p_ref, w_ref, b_ref, out_ref):
    # p_ref: (2*mt, K) bf16 patches -- rows [0:mt) are the "even" pooling
    # positions of this tile, rows [mt:2mt) the matching "odd" positions.
    # w_ref: (K, 128) bf16; b_ref: (1, 128) f32; out_ref: (mt, 128) f32.
    mt = out_ref.shape[0]
    y = jnp.dot(p_ref[...], w_ref[...], preferred_element_type=jnp.float32)
    # maxpool(relu(conv + b)) == relu(max(conv_e, conv_o) + b): bias added once.
    out_ref[...] = jnp.maximum(jnp.maximum(y[:mt], y[mt:]) + b_ref[...], 0.0)


def fc_sigmoid_kernel(x_ref, w_ref, b_ref, out_ref):
    y = jnp.dot(x_ref[...], w_ref[...], preferred_element_type=jnp.float32)
    y = y + b_ref[...]
    # exp on the EUP + approximate reciprocal (also EUP) -> sigmoid
    out_ref[...] = pl.reciprocal(1.0 + jnp.exp(-y), approx=True)


def _mosaic_params():
    return pltpu.CompilerParams(
        dimension_semantics=("parallel",),        # megacore-shardable M axis
        vmem_limit_bytes=32 * 1024 * 1024,        # safe on v7x's 64 MiB VMEM
    )


def conv_relu_pool(patches, wm, bm, mt, mpad):
    _, kdim = patches.shape                       # patches: (2*mpad, K) bf16
    n_tiles = mpad // mt
    return pl.pallas_call(
        conv_relu_pool_kernel,
        out_shape=jax.ShapeDtypeStruct((mpad, LANE), jnp.float32),
        grid=(n_tiles,),
        in_specs=[
            pl.BlockSpec((2 * mt, kdim), lambda i: (i, 0)),
            pl.BlockSpec((kdim, LANE), lambda i: (0, 0)),
            pl.BlockSpec((1, LANE), lambda i: (0, 0)),
        ],
        out_specs=pl.BlockSpec((mt, LANE), lambda i: (i, 0)),
        compiler_params=_mosaic_params(),
    )(patches, wm, bm)


def fc_sigmoid(x, wm, bm, nt):
    npad, kdim = x.shape                          # x: (npad, fc_in) bf16
    return pl.pallas_call(
        fc_sigmoid_kernel,
        out_shape=jax.ShapeDtypeStruct((npad, LANE), jnp.float32),
        grid=(npad // nt,),
        in_specs=[
            pl.BlockSpec((nt, kdim), lambda i: (i, 0)),
            pl.BlockSpec((kdim, LANE), lambda i: (0, 0)),
            pl.BlockSpec((1, LANE), lambda i: (0, 0)),
        ],
        out_specs=pl.BlockSpec((nt, LANE), lambda i: (i, 0)),
        compiler_params=_mosaic_params(),
    )(x, wm, bm)


# ----------------------------------------------------------------------------
# Plain-JAX glue: channels-last im2col with tiled even/odd row layout
# ----------------------------------------------------------------------------
CONV_CFG = (
    ("conv1", dict(cout=16, k=64, s=9, p=32)),
    ("conv2", dict(cout=32, k=3, s=1, p=1)),
    ("conv3", dict(cout=64, k=2, s=1, p=1)),
    ("conv4", dict(cout=64, k=3, s=1, p=1)),
    ("conv5", dict(cout=64, k=3, s=1, p=0)),
)


def _conv_patch_rows(n, lpool, kernel, stride, mt, mpad):
    """(batch, position) indices for the tiled even/odd patch row layout.

    Patch row t*2*mt + h*mt + r holds the window for pooled output row
    m = t*mt + r (flattened over (N, Lpool)) at pooling slot h (0=even, 1=odd).
    """
    m_total = n * lpool
    rows = jnp.arange((mpad // mt) * 2 * mt, dtype=jnp.int32)
    t = rows // (2 * mt)
    rem = rows % (2 * mt)
    h = rem // mt
    r = rem % mt
    m = jnp.minimum(t * mt + r, m_total - 1)      # clamp pad rows (sliced later)
    bi = m // lpool
    j = m % lpool
    left = (2 * j + h) * stride                   # window start in padded length
    pos = left[:, None] + jnp.arange(kernel, dtype=jnp.int32)[None, :]
    bi = jnp.broadcast_to(bi[:, None], pos.shape)
    return bi, pos


def conv_block(x_nlc, wm, bm, cfg):
    """Conv1d -> ReLU -> MaxPool1d(2,2), channels-last, one fused Pallas call."""
    k, s, p, cout = cfg["k"], cfg["s"], cfg["p"], cfg["cout"]
    n, l, c = x_nlc.shape
    xp = jnp.pad(x_nlc, ((0, 0), (p, p), (0, 0)))
    lout = (l + 2 * p - k) // s + 1
    lpool = lout // 2                             # MaxPool(2,2) drops remainder
    m = n * lpool
    mt = min(MT, _round_up(m, 16))
    mpad = _round_up(m, mt)
    bi, pos = _conv_patch_rows(n, lpool, k, s, mt, mpad)
    patches = xp[bi, pos, :].reshape(2 * mpad, k * c).astype(jnp.bfloat16)
    out = conv_relu_pool(patches, wm, bm, mt, mpad)          # (mpad, 128) f32
    return out[:m, :cout].reshape(n, lpool, cout)            # channels-last


def prepare_params(params):
    """One-time layout transform: conv (Cout,Cin,k) -> (k*Cin, 128) bf16, etc."""
    prepped = {}
    for name, _ in CONV_CFG:
        w = params[name + "_w"]                   # (Cout, Cin, k)
        b = params[name + "_b"]
        cout, cin, k = w.shape
        wm = jnp.transpose(w, (2, 1, 0)).reshape(k * cin, cout)   # k-major, c-minor
        prepped[name + "_w"] = jnp.pad(wm, ((0, 0), (0, LANE - cout))).astype(jnp.bfloat16)
        prepped[name + "_b"] = jnp.pad(b, (0, LANE - cout)).reshape(1, LANE).astype(jnp.float32)
    fw = jnp.transpose(params["fc1_w"])                           # (fc_in, 100)
    prepped["fc1_w"] = jnp.pad(fw, ((0, 0), (0, LANE - FC_OUT))).astype(jnp.bfloat16)
    prepped["fc1_b"] = jnp.pad(params["fc1_b"], (0, LANE - FC_OUT)).reshape(1, LANE).astype(jnp.float32)
    return prepped


def wdcnn_forward(x_nlc, prepped):
    # torch does x.transpose(1,2) to get (N, C, L); here the layout choice is
    # folded into the im2col index order and activations stay channels-last.
    x = x_nlc
    for name, cfg in CONV_CFG:
        x = conv_block(x, prepped[name + "_w"], prepped[name + "_b"], cfg)
    n, lpool, c = x.shape
    # torch flattens (N, C, L) channel-major: transpose the (tiny) final
    # activation so the fc weight layout matches the original module.
    flat = jnp.transpose(x, (0, 2, 1)).reshape(n, c * lpool)
    nt = min(MT, _round_up(n, 16))
    npad = _round_up(n, nt)
    xf = jnp.pad(flat, ((0, npad - n), (0, 0))).astype(jnp.bfloat16)
    out = fc_sigmoid(xf, prepped["fc1_w"], prepped["fc1_b"], nt)
    return out[:n, :FC_OUT]


# ----------------------------------------------------------------------------
# Pure-JAX reference (module semantics; bf16 matmul inputs to mirror kernels)
# ----------------------------------------------------------------------------
def ref_forward(x_nlc, params):
    x = jnp.transpose(x_nlc, (0, 2, 1))           # (N, C, L), like torch
    for name, cfg in CONV_CFG:
        w = params[name + "_w"]
        b = params[name + "_b"]
        k, s, p = cfg["k"], cfg["s"], cfg["p"]
        n, c, l = x.shape
        xp = jnp.pad(x, ((0, 0), (0, 0), (p, p)))
        lout = (l + 2 * p - k) // s + 1
        idx = jnp.arange(lout)[:, None] * s + jnp.arange(k)[None, :]
        patches = xp[:, :, idx]                   # (N, C, Lout, k)
        y = jnp.einsum("nclk,ock->nlo",
                       patches.astype(jnp.bfloat16), w.astype(jnp.bfloat16),
                       preferred_element_type=jnp.float32) + b
        y = jnp.maximum(y, 0.0)
        lp = lout // 2
        y = y[:, : 2 * lp].reshape(n, lp, 2, y.shape[-1]).max(axis=2)
        x = jnp.transpose(y, (0, 2, 1))
    flat = x.reshape(x.shape[0], -1)
    y = jnp.dot(flat.astype(jnp.bfloat16), params["fc1_w"].T.astype(jnp.bfloat16),
                preferred_element_type=jnp.float32) + params["fc1_b"]
    return 1.0 / (1.0 + jnp.exp(-y))


# ----------------------------------------------------------------------------
# Deterministic parameter init (shapes from WDCNN.__init__)
# ----------------------------------------------------------------------------
def init_params(key, in_ch, fc_in):
    shapes = {
        "conv1_w": (16, in_ch, 64), "conv1_b": (16,),
        "conv2_w": (32, 16, 3),     "conv2_b": (32,),
        "conv3_w": (64, 32, 2),     "conv3_b": (64,),
        "conv4_w": (64, 64, 3),     "conv4_b": (64,),
        "conv5_w": (64, 64, 3),     "conv5_b": (64,),
        "fc1_w": (FC_OUT, fc_in),   "fc1_b": (FC_OUT,),
    }
    params = {}
    for i, (name, shp) in enumerate(sorted(shapes.items())):
        k = jax.random.fold_in(key, i)
        params[name] = 0.1 * jax.random.normal(k, shp, dtype=jnp.float32)
    return params


def _pipeline_out_len(L):
    l = (L + 2 * 32 - 64) // 9 + 1   # conv1
    l = l // 2                        # pool1
    l = l // 2                        # conv2 (same) + pool2
    l = (l + 1) // 2                  # conv3 (k=2, pad=1) + pool3
    l = l // 2                        # conv4 (same) + pool4
    l = (l - 2) // 2                  # conv5 (k=3, pad=0) + pool5
    return l


if __name__ == "__main__":
    N, L, C = 2, 576, 4               # small; L must be large enough for conv5
    key = jax.random.PRNGKey(0)
    x = jax.random.normal(jax.random.fold_in(key, 100), (N, L, C), dtype=jnp.float32)

    # TODO(synk): the original module sets fc1 in_features = 64*(input_shape[0]//256),
    # which does not match the conv/pool pipeline's actual output length; fc1 is
    # sized here from the true flattened size so the forward pass is runnable.
    fc_in = 64 * _pipeline_out_len(L)
    params = init_params(key, C, fc_in)
    prepped = prepare_params(params)

    fwd = jax.jit(wdcnn_forward)
    out = jax.block_until_ready(fwd(x, prepped))
    ref = jax.block_until_ready(jax.jit(ref_forward)(x, params))

    assert out.shape == (N, FC_OUT), out.shape
    if not bool(jnp.allclose(out, ref, atol=1e-2, rtol=1e-2)):
        err = float(jnp.max(jnp.abs(out - ref)))
        raise AssertionError(f"Pallas output mismatches reference (max |err| = {err})")
    print("KERNEL_OK")
</pallas_src>

<mosaic_0001>
module attributes {stable_mosaic.version = 11 : i64} {
  func.func @conv_relu_pool_kernel(%arg0: i32, %arg1: memref<128x256xbf16, #tpu.memory_space<vmem>>, %arg2: memref<256x128xbf16, #tpu.memory_space<vmem>>, %arg3: memref<1x128xf32, #tpu.memory_space<vmem>>, %arg4: memref<64x128xf32, #tpu.memory_space<vmem>>) attributes {dimension_semantics = [#tpu.dimension_semantics<parallel>], iteration_bounds = array<i64: 1>, scalar_prefetch = 0 : i64, scratch_operands = 0 : i64, tpu.core_type = #tpu.core_type<tc>, window_params = [{transform_indices = @transform_0, window_bounds = array<i64: 128, 256>}, {pipeline_mode = #tpu.pipeline_mode<synchronous>, transform_indices = @transform_1, window_bounds = array<i64: 256, 128>}, {pipeline_mode = #tpu.pipeline_mode<synchronous>, transform_indices = @transform_2, window_bounds = array<i64: 1, 128>}, {transform_indices = @transform_3, window_bounds = array<i64: 64, 128>}]} {
    %c0 = arith.constant 0 : index
    %c0_0 = arith.constant 0 : index
    %0 = vector.load %arg1[%c0, %c0_0] : memref<128x256xbf16, #tpu.memory_space<vmem>>, vector<128x256xbf16>
    %c0_1 = arith.constant 0 : index
    %c0_2 = arith.constant 0 : index
    %1 = vector.load %arg2[%c0_1, %c0_2] : memref<256x128xbf16, #tpu.memory_space<vmem>>, vector<256x128xbf16>
    %cst = arith.constant dense<0.000000e+00> : vector<128x128xf32>
    %2 = tpu.matmul %0, %1, %cst {dimension_numbers = #tpu.dot_dimension_numbers<[1], [0], [0], [1], [0, 0, 1, 1], [], []>} : vector<128x256xbf16>, vector<256x128xbf16>, vector<128x128xf32> -> vector<128x128xf32>
    %3 = vector.extract_strided_slice %2 {offsets = [0, 0], sizes = [64, 128], strides = [1, 1]} : vector<128x128xf32> to vector<64x128xf32>
    %4 = vector.extract_strided_slice %2 {offsets = [64, 0], sizes = [64, 128], strides = [1, 1]} : vector<128x128xf32> to vector<64x128xf32>
    %5 = arith.maximumf %3, %4 : vector<64x128xf32>
    %c0_3 = arith.constant 0 : index
    %c0_4 = arith.constant 0 : index
    %6 = vector.load %arg3[%c0_3, %c0_4] : memref<1x128xf32, #tpu.memory_space<vmem>>, vector<1x128xf32>
    %7 = vector.broadcast %6 : vector<1x128xf32> to vector<64x128xf32>
    %8 = arith.addf %5, %7 : vector<64x128xf32>
    %cst_5 = arith.constant 0.000000e+00 : f32
    %9 = vector.broadcast %cst_5 : f32 to vector<64x128xf32>
    %10 = arith.maximumf %8, %9 : vector<64x128xf32>
    %c0_6 = arith.constant 0 : index
    %c0_7 = arith.constant 0 : index
    %11 = vector.load %arg4[%c0_6, %c0_7] : memref<64x128xf32, #tpu.memory_space<vmem>>, vector<64x128xf32>
    tpu.vector_store %arg4[%c0_6, %c0_7], %10 {strides = array<i32>} : memref<64x128xf32, #tpu.memory_space<vmem>>, vector<64x128xf32>,
    return
  }
  func.func @transform_0(%arg0: i32) -> (i32, i32) {
    %c0_i32 = arith.constant 0 : i32
    %c0_i32_0 = arith.constant 0 : i32
    return %arg0, %c0_i32 : i32, i32
  }
  func.func @transform_1(%arg0: i32) -> (i32, i32) {
    %c0_i32 = arith.constant 0 : i32
    %c0_i32_0 = arith.constant 0 : i32
    %c0_i32_1 = arith.constant 0 : i32
    return %c0_i32, %c0_i32_0 : i32, i32
  }
  func.func @transform_2(%arg0: i32) -> (i32, i32) {
    %c0_i32 = arith.constant 0 : i32
    %c0_i32_0 = arith.constant 0 : i32
    %c0_i32_1 = arith.constant 0 : i32
    return %c0_i32, %c0_i32_0 : i32, i32
  }
  func.func @transform_3(%arg0: i32) -> (i32, i32) {
    %c0_i32 = arith.constant 0 : i32
    %c0_i32_0 = arith.constant 0 : i32
    return %arg0, %c0_i32 : i32, i32
  }
}

module attributes {stable_mosaic.version = 11 : i64} {
  func.func @conv_relu_pool_kernel(%arg0: i32, %arg1: memref<64x48xbf16, #tpu.memory_space<vmem>>, %arg2: memref<48x128xbf16, #tpu.memory_space<vmem>>, %arg3: memref<1x128xf32, #tpu.memory_space<vmem>>, %arg4: memref<32x128xf32, #tpu.memory_space<vmem>>) attributes {dimension_semantics = [#tpu.dimension_semantics<parallel>], iteration_bounds = array<i64: 1>, scalar_prefetch = 0 : i64, scratch_operands = 0 : i64, tpu.core_type = #tpu.core_type<tc>, window_params = [{transform_indices = @transform_0, window_bounds = array<i64: 64, 48>}, {pipeline_mode = #tpu.pipeline_mode<synchronous>, transform_indices = @transform_1, window_bounds = array<i64: 48, 128>}, {pipeline_mode = #tpu.pipeline_mode<synchronous>, transform_indices = @transform_2, window_bounds = array<i64: 1, 128>}, {transform_indices = @transform_3, window_bounds = array<i64: 32, 128>}]} {
    %c0 = arith.constant 0 : index
    %c0_0 = arith.constant 0 : index
    %0 = vector.load %arg1[%c0, %c0_0] : memref<64x48xbf16, #tpu.memory_space<vmem>>, vector<64x48xbf16>
    %c0_1 = arith.constant 0 : index
    %c0_2 = arith.constant 0 : index
    %1 = vector.load %arg2[%c0_1, %c0_2] : memref<48x128xbf16, #tpu.memory_space<vmem>>, vector<48x128xbf16>
    %cst = arith.constant dense<0.000000e+00> : vector<64x128xf32>
    %2 = tpu.matmul %0, %1, %cst {dimension_numbers = #tpu.dot_dimension_numbers<[1], [0], [0], [1], [0, 0, 1, 1], [], []>} : vector<64x48xbf16>, vector<48x128xbf16>, vector<64x128xf32> -> vector<64x128xf32>
    %3 = vector.extract_strided_slice %2 {offsets = [0, 0], sizes = [32, 128], strides = [1, 1]} : vector<64x128xf32> to vector<32x128xf32>
    %4 = vector.extract_strided_slice %2 {offsets = [32, 0], sizes = [32, 128], strides = [1, 1]} : vector<64x128xf32> to vector<32x128xf32>
    %5 = arith.maximumf %3, %4 : vector<32x128xf32>
    %c0_3 = arith.constant 0 : index
    %c0_4 = arith.constant 0 : index
    %6 = vector.load %arg3[%c0_3, %c0_4] : memref<1x128xf32, #tpu.memory_space<vmem>>, vector<1x128xf32>
    %7 = vector.broadcast %6 : vector<1x128xf32> to vector<32x128xf32>
    %8 = arith.addf %5, %7 : vector<32x128xf32>
    %cst_5 = arith.constant 0.000000e+00 : f32
    %9 = vector.broadcast %cst_5 : f32 to vector<32x128xf32>
    %10 = arith.maximumf %8, %9 : vector<32x128xf32>
    %c0_6 = arith.constant 0 : index
    %c0_7 = arith.constant 0 : index
    %11 = vector.load %arg4[%c0_6, %c0_7] : memref<32x128xf32, #tpu.memory_space<vmem>>, vector<32x128xf32>
    tpu.vector_store %arg4[%c0_6, %c0_7], %10 {strides = array<i32>} : memref<32x128xf32, #tpu.memory_space<vmem>>, vector<32x128xf32>,
    return
  }
  func.func @transform_0(%arg0: i32) -> (i32, i32) {
    %c0_i32 = arith.constant 0 : i32
    %c0_i32_0 = arith.constant 0 : i32
    return %arg0, %c0_i32 : i32, i32
  }
  func.func @transform_1(%arg0: i32) -> (i32, i32) {
    %c0_i32 = arith.constant 0 : i32
    %c0_i32_0 = arith.constant 0 : i32
    %c0_i32_1 = arith.constant 0 : i32
    return %c0_i32, %c0_i32_0 : i32, i32
  }
  func.func @transform_2(%arg0: i32) -> (i32, i32) {
    %c0_i32 = arith.constant 0 : i32
    %c0_i32_0 = arith.constant 0 : i32
    %c0_i32_1 = arith.constant 0 : i32
    return %c0_i32, %c0_i32_0 : i32, i32
  }
  func.func @transform_3(%arg0: i32) -> (i32, i32) {
    %c0_i32 = arith.constant 0 : i32
    %c0_i32_0 = arith.constant 0 : i32
    return %arg0, %c0_i32 : i32, i32
  }
}

module attributes {stable_mosaic.version = 11 : i64} {
  func.func @conv_relu_pool_kernel(%arg0: i32, %arg1: memref<32x64xbf16, #tpu.memory_space<vmem>>, %arg2: memref<64x128xbf16, #tpu.memory_space<vmem>>, %arg3: memref<1x128xf32, #tpu.memory_space<vmem>>, %arg4: memref<16x128xf32, #tpu.memory_space<vmem>>) attributes {dimension_semantics = [#tpu.dimension_semantics<parallel>], iteration_bounds = array<i64: 1>, scalar_prefetch = 0 : i64, scratch_operands = 0 : i64, tpu.core_type = #tpu.core_type<tc>, window_params = [{transform_indices = @transform_0, window_bounds = array<i64: 32, 64>}, {pipeline_mode = #tpu.pipeline_mode<synchronous>, transform_indices = @transform_1, window_bounds = array<i64: 64, 128>}, {pipeline_mode = #tpu.pipeline_mode<synchronous>, transform_indices = @transform_2, window_bounds = array<i64: 1, 128>}, {transform_indices = @transform_3, window_bounds = array<i64: 16, 128>}]} {
    %c0 = arith.constant 0 : index
    %c0_0 = arith.constant 0 : index
    %0 = vector.load %arg1[%c0, %c0_0] : memref<32x64xbf16, #tpu.memory_space<vmem>>, vector<32x64xbf16>
    %c0_1 = arith.constant 0 : index
    %c0_2 = arith.constant 0 : index
    %1 = vector.load %arg2[%c0_1, %c0_2] : memref<64x128xbf16, #tpu.memory_space<vmem>>, vector<64x128xbf16>
    %cst = arith.constant dense<0.000000e+00> : vector<32x128xf32>
    %2 = tpu.matmul %0, %1, %cst {dimension_numbers = #tpu.dot_dimension_numbers<[1], [0], [0], [1], [0, 0, 1, 1], [], []>} : vector<32x64xbf16>, vector<64x128xbf16>, vector<32x128xf32> -> vector<32x128xf32>
    %3 = vector.extract_strided_slice %2 {offsets = [0, 0], sizes = [16, 128], strides = [1, 1]} : vector<32x128xf32> to vector<16x128xf32>
    %4 = vector.extract_strided_slice %2 {offsets = [16, 0], sizes = [16, 128], strides = [1, 1]} : vector<32x128xf32> to vector<16x128xf32>
    %5 = arith.maximumf %3, %4 : vector<16x128xf32>
    %c0_3 = arith.constant 0 : index
    %c0_4 = arith.constant 0 : index
    %6 = vector.load %arg3[%c0_3, %c0_4] : memref<1x128xf32, #tpu.memory_space<vmem>>, vector<1x128xf32>
    %7 = vector.broadcast %6 : vector<1x128xf32> to vector<16x128xf32>
    %8 = arith.addf %5, %7 : vector<16x128xf32>
    %cst_5 = arith.constant 0.000000e+00 : f32
    %9 = vector.broadcast %cst_5 : f32 to vector<16x128xf32>
    %10 = arith.maximumf %8, %9 : vector<16x128xf32>
    %c0_6 = arith.constant 0 : index
    %c0_7 = arith.constant 0 : index
    %11 = vector.load %arg4[%c0_6, %c0_7] : memref<16x128xf32, #tpu.memory_space<vmem>>, vector<16x128xf32>
    tpu.vector_store %arg4[%c0_6, %c0_7], %10 {strides = array<i32>} : memref<16x128xf32, #tpu.memory_space<vmem>>, vector<16x128xf32>,
    return
  }
  func.func @transform_0(%arg0: i32) -> (i32, i32) {
    %c0_i32 = arith.constant 0 : i32
    %c0_i32_0 = arith.constant 0 : i32
    return %arg0, %c0_i32 : i32, i32
  }
  func.func @transform_1(%arg0: i32) -> (i32, i32) {
    %c0_i32 = arith.constant 0 : i32
    %c0_i32_0 = arith.constant 0 : i32
    %c0_i32_1 = arith.constant 0 : i32
    return %c0_i32, %c0_i32_0 : i32, i32
  }
  func.func @transform_2(%arg0: i32) -> (i32, i32) {
    %c0_i32 = arith.constant 0 : i32
    %c0_i32_0 = arith.constant 0 : i32
    %c0_i32_1 = arith.constant 0 : i32
    return %c0_i32, %c0_i32_0 : i32, i32
  }
  func.func @transform_3(%arg0: i32) -> (i32, i32) {
    %c0_i32 = arith.constant 0 : i32
    %c0_i32_0 = arith.constant 0 : i32
    return %arg0, %c0_i32 : i32, i32
  }
}

module attributes {stable_mosaic.version = 11 : i64} {
  func.func @conv_relu_pool_kernel(%arg0: i32, %arg1: memref<32x192xbf16, #tpu.memory_space<vmem>>, %arg2: memref<192x128xbf16, #tpu.memory_space<vmem>>, %arg3: memref<1x128xf32, #tpu.memory_space<vmem>>, %arg4: memref<16x128xf32, #tpu.memory_space<vmem>>) attributes {dimension_semantics = [#tpu.dimension_semantics<parallel>], iteration_bounds = array<i64: 1>, scalar_prefetch = 0 : i64, scratch_operands = 0 : i64, tpu.core_type = #tpu.core_type<tc>, window_params = [{transform_indices = @transform_0, window_bounds = array<i64: 32, 192>}, {pipeline_mode = #tpu.pipeline_mode<synchronous>, transform_indices = @transform_1, window_bounds = array<i64: 192, 128>}, {pipeline_mode = #tpu.pipeline_mode<synchronous>, transform_indices = @transform_2, window_bounds = array<i64: 1, 128>}, {transform_indices = @transform_3, window_bounds = array<i64: 16, 128>}]} {
    %c0 = arith.constant 0 : index
    %c0_0 = arith.constant 0 : index
    %0 = vector.load %arg1[%c0, %c0_0] : memref<32x192xbf16, #tpu.memory_space<vmem>>, vector<32x192xbf16>
    %c0_1 = arith.constant 0 : index
    %c0_2 = arith.constant 0 : index
    %1 = vector.load %arg2[%c0_1, %c0_2] : memref<192x128xbf16, #tpu.memory_space<vmem>>, vector<192x128xbf16>
    %cst = arith.constant dense<0.000000e+00> : vector<32x128xf32>
    %2 = tpu.matmul %0, %1, %cst {dimension_numbers = #tpu.dot_dimension_numbers<[1], [0], [0], [1], [0, 0, 1, 1], [], []>} : vector<32x192xbf16>, vector<192x128xbf16>, vector<32x128xf32> -> vector<32x128xf32>
    %3 = vector.extract_strided_slice %2 {offsets = [0, 0], sizes = [16, 128], strides = [1, 1]} : vector<32x128xf32> to vector<16x128xf32>
    %4 = vector.extract_strided_slice %2 {offsets = [16, 0], sizes = [16, 128], strides = [1, 1]} : vector<32x128xf32> to vector<16x128xf32>
    %5 = arith.maximumf %3, %4 : vector<16x128xf32>
    %c0_3 = arith.constant 0 : index
    %c0_4 = arith.constant 0 : index
    %6 = vector.load %arg3[%c0_3, %c0_4] : memref<1x128xf32, #tpu.memory_space<vmem>>, vector<1x128xf32>
    %7 = vector.broadcast %6 : vector<1x128xf32> to vector<16x128xf32>
    %8 = arith.addf %5, %7 : vector<16x128xf32>
    %cst_5 = arith.constant 0.000000e+00 : f32
    %9 = vector.broadcast %cst_5 : f32 to vector<16x128xf32>
    %10 = arith.maximumf %8, %9 : vector<16x128xf32>
    %c0_6 = arith.constant 0 : index
    %c0_7 = arith.constant 0 : index
    %11 = vector.load %arg4[%c0_6, %c0_7] : memref<16x128xf32, #tpu.memory_space<vmem>>, vector<16x128xf32>
    tpu.vector_store %arg4[%c0_6, %c0_7], %10 {strides = array<i32>} : memref<16x128xf32, #tpu.memory_space<vmem>>, vector<16x128xf32>,
    return
  }
  func.func @transform_0(%arg0: i32) -> (i32, i32) {
    %c0_i32 = arith.constant 0 : i32
    %c0_i32_0 = arith.constant 0 : i32
    return %arg0, %c0_i32 : i32, i32
  }
  func.func @transform_1(%arg0: i32) -> (i32, i32) {
    %c0_i32 = arith.constant 0 : i32
    %c0_i32_0 = arith.constant 0 : i32
    %c0_i32_1 = arith.constant 0 : i32
    return %c0_i32, %c0_i32_0 : i32, i32
  }
  func.func @transform_2(%arg0: i32) -> (i32, i32) {
    %c0_i32 = arith.constant 0 : i32
    %c0_i32_0 = arith.constant 0 : i32
    %c0_i32_1 = arith.constant 0 : i32
    return %c0_i32, %c0_i32_0 : i32, i32
  }
  func.func @transform_3(%arg0: i32) -> (i32, i32) {
    %c0_i32 = arith.constant 0 : i32
    %c0_i32_0 = arith.constant 0 : i32
    return %arg0, %c0_i32 : i32, i32
  }
}

module attributes {stable_mosaic.version = 11 : i64} {
  func.func @fc_sigmoid_kernel(%arg0: i32, %arg1: memref<16x64xbf16, #tpu.memory_space<vmem>>, %arg2: memref<64x128xbf16, #tpu.memory_space<vmem>>, %arg3: memref<1x128xf32, #tpu.memory_space<vmem>>, %arg4: memref<16x128xf32, #tpu.memory_space<vmem>>) attributes {dimension_semantics = [#tpu.dimension_semantics<parallel>], iteration_bounds = array<i64: 1>, scalar_prefetch = 0 : i64, scratch_operands = 0 : i64, tpu.core_type = #tpu.core_type<tc>, window_params = [{transform_indices = @transform_0, window_bounds = array<i64: 16, 64>}, {pipeline_mode = #tpu.pipeline_mode<synchronous>, transform_indices = @transform_1, window_bounds = array<i64: 64, 128>}, {pipeline_mode = #tpu.pipeline_mode<synchronous>, transform_indices = @transform_2, window_bounds = array<i64: 1, 128>}, {transform_indices = @transform_3, window_bounds = array<i64: 16, 128>}]} {
    %c0 = arith.constant 0 : index
    %c0_0 = arith.constant 0 : index
    %0 = vector.load %arg1[%c0, %c0_0] : memref<16x64xbf16, #tpu.memory_space<vmem>>, vector<16x64xbf16>
    %c0_1 = arith.constant 0 : index
    %c0_2 = arith.constant 0 : index
    %1 = vector.load %arg2[%c0_1, %c0_2] : memref<64x128xbf16, #tpu.memory_space<vmem>>, vector<64x128xbf16>
    %cst = arith.constant dense<0.000000e+00> : vector<16x128xf32>
    %2 = tpu.matmul %0, %1, %cst {dimension_numbers = #tpu.dot_dimension_numbers<[1], [0], [0], [1], [0, 0, 1, 1], [], []>} : vector<16x64xbf16>, vector<64x128xbf16>, vector<16x128xf32> -> vector<16x128xf32>
    %c0_3 = arith.constant 0 : index
    %c0_4 = arith.constant 0 : index
    %3 = vector.load %arg3[%c0_3, %c0_4] : memref<1x128xf32, #tpu.memory_space<vmem>>, vector<1x128xf32>
    %4 = vector.broadcast %3 : vector<1x128xf32> to vector<16x128xf32>
    %5 = arith.addf %2, %4 : vector<16x128xf32>
    %cst_5 = arith.constant 0.000000e+00 : f32
    %6 = vector.broadcast %cst_5 : f32 to vector<16x128xf32>
    %7 = arith.subf %6, %5 : vector<16x128xf32>
    %8 = math.exp %7 : vector<16x128xf32>
    %cst_6 = arith.constant 1.000000e+00 : f32
    %9 = vector.broadcast %cst_6 : f32 to vector<16x128xf32>
    %10 = arith.addf %9, %8 : vector<16x128xf32>
    %11 = tpu.reciprocal %10 {approx = true} : vector<16x128xf32> -> vector<16x128xf32>
    %c0_7 = arith.constant 0 : index
    %c0_8 = arith.constant 0 : index
    %12 = vector.load %arg4[%c0_7, %c0_8] : memref<16x128xf32, #tpu.memory_space<vmem>>, vector<16x128xf32>
    tpu.vector_store %arg4[%c0_7, %c0_8], %11 {strides = array<i32>} : memref<16x128xf32, #tpu.memory_space<vmem>>, vector<16x128xf32>,
    return
  }
  func.func @transform_0(%arg0: i32) -> (i32, i32) {
    %c0_i32 = arith.constant 0 : i32
    %c0_i32_0 = arith.constant 0 : i32
    return %arg0, %c0_i32 : i32, i32
  }
  func.func @transform_1(%arg0: i32) -> (i32, i32) {
    %c0_i32 = arith.constant 0 : i32
    %c0_i32_0 = arith.constant 0 : i32
    %c0_i32_1 = arith.constant 0 : i32
    return %c0_i32, %c0_i32_0 : i32, i32
  }
  func.func @transform_2(%arg0: i32) -> (i32, i32) {
    %c0_i32 = arith.constant 0 : i32
    %c0_i32_0 = arith.constant 0 : i32
    %c0_i32_1 = arith.constant 0 : i32
    return %c0_i32, %c0_i32_0 : i32, i32
  }
  func.func @transform_3(%arg0: i32) -> (i32, i32) {
    %c0_i32 = arith.constant 0 : i32
    %c0_i32_0 = arith.constant 0 : i32
    return %arg0, %c0_i32 : i32, i32
  }
}

</mosaic_0001>

<bundles_post_ra>
// kernel: wdcnn_forward.6
= control target key start
LH: loop header
LB: loop body
LE: loop exit
PB: predicated region body
PF: predicated region fallthrough
CT: control target
= control target key end

     0   :  { %s685_s1 = inlined_call_operand.vmem [shape: bf16[256,128], index: 1, kind: input, shape index: {}]   ;;  %s686_s0 = inlined_call_operand.vmem [shape: bf16[128,256], index: 0, kind: input, shape index: {}]   ;;  %s687_s2 = inlined_call_operand.vmem [shape: f32[1,128], index: 2, kind: input, shape index: {}]   ;;  %s688_s3 = inlined_call_operand.vmem [shape: f32[64,128], index: 3, kind: output, shape index: {}]  }
   0x1   :  { %v492_v0 = vld [vmem:[%s685_s1 + $0x40] sm:$0xff]   ;;  %v494_v2 = vld [vmem:[%s685_s1 + $0x48] sm:$0xff]   ;;  %v496_v4 = vld [vmem:[%s685_s1 + $0x50] sm:$0xff]  }
   0x2   :  { %v493_v1 = vld [vmem:[%s685_s1] sm:$0xff]   ;;  %412 = vmatprep.subr.bf16.mxu0 %v492_v0  ;;  %476 = vmatprep.subr.bf16.mxu1 %v492_v0  ;;  %v495_v3 = vld [vmem:[%s685_s1 + $0x8] sm:$0xff]   ;;  %v497_v5 = vld [vmem:[%s685_s1 + $0x10] sm:$0xff]  }
   0x3   :  { %413 = vmatpush3.bf16.msra.mxu0 %v493_v1  ;;  %484 = vmatpush3.bf16.msra.mxu1 %v493_v1  ;;  %v498_v6 = vld [vmem:[%s685_s1 + $0x58] sm:$0xff]   ;;  %v500_v8 = vld [vmem:[%s685_s1 + $0x60] sm:$0xff]   ;;  %v502_v10 = vld [vmem:[%s685_s1 + $0x68] sm:$0xff]  }
   0x4   :  { %414 = vmatprep.subr.bf16.mxu0 %v494_v2  ;;  %477 = vmatprep.subr.bf16.mxu1 %v494_v2  ;;  %v499_v7 = vld [vmem:[%s685_s1 + $0x18] sm:$0xff]   ;;  %v501_v9 = vld [vmem:[%s685_s1 + $0x20] sm:$0xff]   ;;  %v503_v13 = vld [vmem:[%s685_s1 + $0x28] sm:$0xff]  }
   0x5   :  { %v510_v11 = vld [vmem:[%s686_s0 + $0x4] ss:$8 sps:$4 sm:$0xff]   ;;  %v504_v14 = vld [vmem:[%s685_s1 + $0x70] sm:$0xff]   ;;  %v506_v16 = vld [vmem:[%s685_s1 + $0x78] sm:$0xff]  }
   0x6   :  { %v513_v12 = vld [vmem:[%s686_s0 + $0x44] ss:$8 sps:$4 sm:$0xff]   ;;  %271 = vmatprep.mubr.bf16.mxu0 %v510_v11  ;;  %v505_v15 = vld [vmem:[%s685_s1 + $0x30] sm:$0xff]   ;;  %v507_v17 = vld [vmem:[%s685_s1 + $0x38] sm:$0xff]  }
   0x7   :  { %415 = vmatpush3.bf16.msra.mxu0 %v495_v3  ;;  %485 = vmatpush3.bf16.msra.mxu1 %v495_v3  ;;  %v508_v18 = vld [vmem:[%s686_s0] ss:$8 sps:$4 sm:$0xff]   ;;  %v514_v20 = vld [vmem:[%s686_s0 + $0x14] ss:$8 sps:$4 sm:$0xff]   ;;  %v518_v22 = vld [vmem:[%s686_s0 + $0x10] ss:$8 sps:$4 sm:$0xff]  }
   0x8   :  { %416 = vmatprep.subr.bf16.mxu0 %v496_v4  ;;  %478 = vmatprep.subr.bf16.mxu1 %v496_v4  ;;  %v511_v19 = vld [vmem:[%s686_s0 + $0x40] ss:$8 sps:$4 sm:$0xff]   ;;  %v516_v21 = vld [vmem:[%s686_s0 + $0x54] ss:$8 sps:$4 sm:$0xff]   ;;  %v519_v23 = vld [vmem:[%s686_s0 + $0x50] ss:$8 sps:$4 sm:$0xff]  }
   0x9   :  { %303 = vmatprep.mubr.bf16.mxu1 %v513_v12  ;;  %v520_v24 = vld [vmem:[%s686_s0 + $0x24] ss:$8 sps:$4 sm:$0xff]   ;;  %v524_v26 = vld [vmem:[%s686_s0 + $0x20] ss:$8 sps:$4 sm:$0xff]   ;;  %v526_v28 = vld [vmem:[%s686_s0 + $0x34] ss:$8 sps:$4 sm:$0xff]  }
   0xa   :  { %v522_v25 = vld [vmem:[%s686_s0 + $0x64] ss:$8 sps:$4 sm:$0xff]   ;;  %v525_v27 = vld [vmem:[%s686_s0 + $0x60] ss:$8 sps:$4 sm:$0xff]   ;;  %v528_v29 = vld [vmem:[%s686_s0 + $0x74] ss:$8 sps:$4 sm:$0xff]  }
   0xb   :  { %417 = vmatpush3.bf16.msra.mxu0 %v497_v5  ;;  %486 = vmatpush3.bf16.msra.mxu1 %v497_v5  ;;  %v530_v30 = vld [vmem:[%s686_s0 + $0x30] ss:$8 sps:$4 sm:$0xff]   ;;  %v651_v40 = vld [vmem:[%s687_s2] ss:$0 sm:$0xff] }
   0xc   :  { %418 = vmatprep.subr.bf16.mxu0 %v498_v6  ;;  %479 = vmatprep.subr.bf16.mxu1 %v498_v6  ;;  %v531_v31 = vld [vmem:[%s686_s0 + $0x70] ss:$8 sps:$4 sm:$0xff]  }
   0xf   :  { %419 = vmatpush3.bf16.msra.mxu0 %v499_v7  ;;  %487 = vmatpush3.bf16.msra.mxu1 %v499_v7 }
  0x10   :  { %420 = vmatprep.subr.bf16.mxu0 %v500_v8  ;;  %480 = vmatprep.subr.bf16.mxu1 %v500_v8 }
  0x13   :  { %421 = vmatpush3.bf16.msra.mxu0 %v501_v9  ;;  %488 = vmatpush3.bf16.msra.mxu1 %v501_v9 }
  0x14   :  { %422 = vmatprep.subr.bf16.mxu0 %v502_v10  ;;  %481 = vmatprep.subr.bf16.mxu1 %v502_v10 }
  0x17   :  { %423 = vmatpush3.bf16.msra.mxu0 %v503_v13  ;;  %489 = vmatpush3.bf16.msra.mxu1 %v503_v13 }
  0x18   :  { %424 = vmatprep.subr.bf16.mxu0 %v504_v14  ;;  %482 = vmatprep.subr.bf16.mxu1 %v504_v14 }
  0x1b   :  { %425 = vmatpush3.bf16.msra.mxu0 %v505_v15  ;;  %490 = vmatpush3.bf16.msra.mxu1 %v505_v15 }
  0x1c   :  { %426 = vmatprep.subr.bf16.mxu0 %v506_v16  ;;  %483 = vmatprep.subr.bf16.mxu1 %v506_v16 }
  0x1f   :  { %427 = vmatpush3.bf16.msra.mxu0 %v507_v17  ;;  %491 = vmatpush3.bf16.msra.mxu1 %v507_v17 }
  0x22   :  { %272 = vmatmul.mubr.bf16.vlgmr.msra.gmra.mrb[0].mxu0 %v508_v18  ;;  %304 = vmatmul.mubr.bf16.vlgmr.msra.gmra.mrb[0].mxu1 %v511_v19 }
  0x23   :  { %279 = vmatprep.mubr.bf16.mxu0 %v514_v20  ;;  %311 = vmatprep.mubr.bf16.mxu1 %v516_v21 }
  0x2a   :  { %280 = vmatmul.mubr.bf16.gmra.mrb[4].mxu0 %v518_v22  ;;  %312 = vmatmul.mubr.bf16.gmra.mrb[4].mxu1 %v519_v23 }
  0x2b   :  { %287 = vmatprep.mubr.bf16.mxu0 %v520_v24  ;;  %319 = vmatprep.mubr.bf16.mxu1 %v522_v25 }
  0x32   :  { %288 = vmatmul.mubr.bf16.gmra.mrb[8].mxu0 %v524_v26  ;;  %320 = vmatmul.mubr.bf16.gmra.mrb[8].mxu1 %v525_v27 }
  0x33   :  { %295 = vmatprep.mubr.bf16.mxu0 %v526_v28  ;;  %327 = vmatprep.mubr.bf16.mxu1 %v528_v29 }
  0x3a   :  { %296 = vmatmul.mubr.bf16.gmra.mrb[12].mxu0 %v530_v30  ;;  %328 = vmatmul.mubr.bf16.gmra.mrb[12].mxu1 %v531_v31 }
  0xf5   :  { %v428_v32 = vpop.f32.mrb[0].mxu0  ;;  %v452_v33 = vpop.f32.mrb[0].mxu1 }
  0xf6   :  { %v429_v34 = vpop.f32.mrb[1].mxu0  ;;  %v453_v35 = vpop.f32.mrb[1].mxu1 }
  0xf7   :  { %v430_v36 = vadd.f32 %v429_v34, %v428_v32  ;;  %v454_v37 = vadd.f32 %v453_v35, %v452_v33  ;;  %v431_v38 = vpop.f32.mrb[2].mxu0  ;;  %v455_v39 = vpop.f32.mrb[2].mxu1 }
  0xf8   :  { %v432_v41 = vpop.f32.mrb[3].mxu0  ;;  %v456_v42 = vpop.f32.mrb[3].mxu1 }
  0xf9   :  { %v336_v43 = vmax.f32 %v430_v36, %v454_v37  ;;  %v433_v44 = vadd.f32 %v432_v41, %v431_v38  ;;  %v457_v45 = vadd.f32 %v456_v42, %v455_v39 }
  0xfb   :  { %v351_v46 = vadd.f32 %v651_v40, %v336_v43  ;;  %v337_v47 = vmax.f32 %v433_v44, %v457_v45 }
  0xfd   :  { %v359_v48 = vmax.f32 %v351_v46, 0.0  ;;  %v352_v49 = vadd.f32 %v651_v40, %v337_v47  ;;  %v434_v50 = vpop.f32.mrb[4].mxu0  ;;  %v458_v51 = vpop.f32.mrb[4].mxu1 }
  0xfe   :  { %v435_v52 = vpop.f32.mrb[5].mxu0  ;;  %v459_v53 = vpop.f32.mrb[5].mxu1 }
  0xff   :  { %367 = vst [vmem:[%s688_s3] sm:$0xff] %v359_v48  ;;  %v360_v54 = vmax.f32 %v352_v49, 0.0  ;;  %v436_v55 = vadd.f32 %v435_v52, %v434_v50  ;;  %v460_v56 = vadd.f32 %v459_v53, %v458_v51  ;;  %v437_v57 = vpop.f32.mrb[6].mxu0  ;;  %v461_v58 = vpop.f32.mrb[6].mxu1 }
 0x100   :  { %v438_v59 = vpop.f32.mrb[7].mxu0  ;;  %v462_v60 = vpop.f32.mrb[7].mxu1 }
 0x101   :  { %368 = vst [vmem:[%s688_s3 + $0x8] sm:$0xff] %v360_v54  ;;  %v338_v61 = vmax.f32 %v436_v55, %v460_v56  ;;  %v439_v62 = vadd.f32 %v438_v59, %v437_v57  ;;  %v463_v63 = vadd.f32 %v462_v60, %v461_v58 }
 0x103   :  { %v353_v0 = vadd.f32 %v651_v40, %v338_v61  ;;  %v339_v1 = vmax.f32 %v439_v62, %v463_v63 }
 0x105   :  { %v361_v2 = vmax.f32 %v353_v0, 0.0  ;;  %v354_v3 = vadd.f32 %v651_v40, %v339_v1  ;;  %v440_v4 = vpop.f32.mrb[8].mxu0  ;;  %v464_v5 = vpop.f32.mrb[8].mxu1 }
 0x106   :  { %v441_v6 = vpop.f32.mrb[9].mxu0  ;;  %v465_v7 = vpop.f32.mrb[9].mxu1 }
 0x107   :  { %369 = vst [vmem:[%s688_s3 + $0x10] sm:$0xff] %v361_v2  ;;  %v362_v8 = vmax.f32 %v354_v3, 0.0  ;;  %v442_v9 = vadd.f32 %v441_v6, %v440_v4  ;;  %v466_v10 = vadd.f32 %v465_v7, %v464_v5  ;;  %v443_v11 = vpop.f32.mrb[10].mxu0  ;;  %v467_v12 = vpop.f32.mrb[10].mxu1 }
 0x108   :  { %v444_v13 = vpop.f32.mrb[11].mxu0  ;;  %v468_v14 = vpop.f32.mrb[11].mxu1 }
 0x109   :  { %370 = vst [vmem:[%s688_s3 + $0x18] sm:$0xff] %v362_v8  ;;  %v340_v15 = vmax.f32 %v442_v9, %v466_v10  ;;  %v445_v16 = vadd.f32 %v444_v13, %v443_v11  ;;  %v469_v17 = vadd.f32 %v468_v14, %v467_v12 }
 0x10b   :  { %v355_v18 = vadd.f32 %v651_v40, %v340_v15  ;;  %v341_v19 = vmax.f32 %v445_v16, %v469_v17 }
 0x10d   :  { %v363_v20 = vmax.f32 %v355_v18, 0.0  ;;  %v356_v21 = vadd.f32 %v651_v40, %v341_v19  ;;  %v446_v22 = vpop.f32.mrb[12].mxu0  ;;  %v470_v23 = vpop.f32.mrb[12].mxu1 }
 0x10e   :  { %v447_v24 = vpop.f32.mrb[13].mxu0  ;;  %v471_v25 = vpop.f32.mrb[13].mxu1 }
 0x10f   :  { %371 = vst [vmem:[%s688_s3 + $0x20] sm:$0xff] %v363_v20  ;;  %v364_v26 = vmax.f32 %v356_v21, 0.0  ;;  %v448_v27 = vadd.f32 %v447_v24, %v446_v22  ;;  %v472_v28 = vadd.f32 %v471_v25, %v470_v23  ;;  %v449_v29 = vpop.f32.mrb[14].mxu0  ;;  %v473_v30 = vpop.f32.mrb[14].mxu1 }
 0x110   :  { %v450_v31 = vpop.f32.mrb[15].mxu0  ;;  %v474_v32 = vpop.f32.mrb[15].mxu1 }
 0x111   :  { %372 = vst [vmem:[%s688_s3 + $0x28] sm:$0xff] %v364_v26  ;;  %v342_v33 = vmax.f32 %v448_v27, %v472_v28  ;;  %v451_v34 = vadd.f32 %v450_v31, %v449_v29  ;;  %v475_v35 = vadd.f32 %v474_v32, %v473_v30 }
 0x113   :  { %v357_v36 = vadd.f32 %v651_v40, %v342_v33  ;;  %v343_v37 = vmax.f32 %v451_v34, %v475_v35 }
 0x115   :  { %v365_v38 = vmax.f32 %v357_v36, 0.0  ;;  %v358_v39 = vadd.f32 %v651_v40, %v343_v37 }
 0x117   :  { %373 = vst [vmem:[%s688_s3 + $0x30] sm:$0xff] %v365_v38  ;;  %v366_v41 = vmax.f32 %v358_v39, 0.0 }
 0x119   :  { %374 = vst [vmem:[%s688_s3 + $0x38] sm:$0xff] %v366_v41 }

// kernel: wdcnn_forward.7
= control target key start
LH: loop header
LB: loop body
LE: loop exit
PB: predicated region body
PF: predicated region fallthrough
CT: control target
= control target key end

     0   :  { %vm67_vm0 = vcmask 392192   ;;  %s278_s1 = inlined_call_operand.vmem [shape: bf16[48,128], index: 1, kind: input, shape index: {}]   ;;  %s279_s0 = inlined_call_operand.vmem [shape: bf16[64,48], index: 0, kind: input, shape index: {}]   ;;  %s280_s2 = inlined_call_operand.vmem [shape: f32[1,128], index: 2, kind: input, shape index: {}]   ;;  %s281_s3 = inlined_call_operand.vmem [shape: f32[32,128], index: 3, kind: output, shape index: {}]  }
   0x1   :  { %v211_v0 = vld [vmem:[%s278_s1] sm:$0xff]   ;;  %v212_v1 = vld [vmem:[%s278_s1 + $0x8] sm:$0xff]   ;;  %v213_v2 = vld [vmem:[%s278_s1 + $0x10] sm:$0xff]  }
   0x2   :  { %191 = vmatprep.subr.bf16.mxu0 %v211_v0  ;;  %205 = vmatprep.subr.bf16.mxu1 %v211_v0  ;;  %v214_v3 = vld [vmem:[%s279_s0] sm:$0xff]   ;;  %v215_v4 = vld [vmem:[%s279_s0 + $0x10] sm:$0xff]   ;;  %v216_v5 = vld [vmem:[%s279_s0 + $0x8] sm:$0xff]  }
   0x3   :  { %192 = vmatpush3.bf16.msra.mxu0 %v211_v0  ;;  %208 = vmatpush3.bf16.msra.mxu1 %v211_v0  ;;  %v217_v6 = vld [vmem:[%s279_s0 + $0x18] sm:$0xff]   ;;  %v183_v9 = vld [vmem:[%s280_s2] ss:$0 sm:$0xff] }
   0x4   :  { %193 = vmatprep.subr.bf16.mxu0 %v212_v1  ;;  %206 = vmatprep.subr.bf16.mxu1 %v212_v1 }
   0x5   :  { %197 = vmatprep.mubr.msk.bf16.mxu0 %vm67_vm0, %v214_v3  ;;  %201 = vmatprep.mubr.msk.bf16.mxu1 %vm67_vm0, %v215_v4 }
   0x7   :  { %194 = vmatpush3.bf16.msra.mxu0 %v212_v1  ;;  %209 = vmatpush3.bf16.msra.mxu1 %v212_v1 }
   0x8   :  { %195 = vmatprep.subr.bf16.mxu0 %v213_v2  ;;  %207 = vmatprep.subr.bf16.mxu1 %v213_v2 }
   0xb   :  { %196 = vmatpush3.bf16.msra.mxu0 %v213_v2  ;;  %210 = vmatpush3.bf16.msra.mxu1 %v213_v2 }
   0xe   :  { %198 = vmatmul.mubr.msk.bf16.vlgmr.msra.gmra.mrb[0].mxu0 %vm67_vm0, %v216_v5  ;;  %202 = vmatmul.mubr.msk.bf16.vlgmr.msra.gmra.mrb[0].mxu1 %vm67_vm0, %v217_v6 }
  0xe1   :  { %v199_v7 = vpop.f32.mrb[0].mxu0  ;;  %v203_v8 = vpop.f32.mrb[0].mxu1 }
  0xe2   :  { %v147_v10 = vmax.f32 %v199_v7, %v203_v8  ;;  %v114_v11 = vpop.f32.mrb[1].mxu0  ;;  %v130_v12 = vpop.f32.mrb[1].mxu1 }
  0xe3   :  { %v145_v13 = vmax.f32 %v114_v11, %v130_v12  ;;  %v200_v14 = vpop.f32.mrb[2].mxu0  ;;  %v204_v15 = vpop.f32.mrb[2].mxu1 }
  0xe4   :  { %v158_v16 = vadd.f32 %v183_v9, %v147_v10  ;;  %v148_v17 = vmax.f32 %v200_v14, %v204_v15  ;;  %v117_v18 = vpop.f32.mrb[3].mxu0  ;;  %v133_v19 = vpop.f32.mrb[3].mxu1 }
  0xe5   :  { %v156_v20 = vadd.f32 %v183_v9, %v145_v13  ;;  %v146_v21 = vmax.f32 %v117_v18, %v133_v19 }
  0xe6   :  { %v162_v22 = vmax.f32 %v158_v16, 0.0  ;;  %v159_v23 = vadd.f32 %v183_v9, %v148_v17 }
  0xe7   :  { %v160_v24 = vmax.f32 %v156_v20, 0.0  ;;  %v157_v25 = vadd.f32 %v183_v9, %v146_v21 }
  0xe8   :  { %166 = vst [vmem:[%s281_s3 + $0x10] sm:$0xff] %v162_v22  ;;  %v163_v26 = vmax.f32 %v159_v23, 0.0 }
  0xe9   :  { %164 = vst [vmem:[%s281_s3] sm:$0xff] %v160_v24  ;;  %v161_v27 = vmax.f32 %v157_v25, 0.0 }
  0xea   :  { %167 = vst [vmem:[%s281_s3 + $0x18] sm:$0xff] %v163_v26 }
  0xeb   :  { %165 = vst [vmem:[%s281_s3 + $0x8] sm:$0xff] %v161_v27 }

// kernel: wdcnn_forward.8
= control target key start
LH: loop header
LB: loop body
LE: loop exit
PB: predicated region body
PF: predicated region fallthrough
CT: control target
= control target key end

     0   :  { %vm61_vm0 = vcmask 523264   ;;  %s216_s1 = inlined_call_operand.vmem [shape: bf16[64,128], index: 1, kind: input, shape index: {}]   ;;  %s217_s0 = inlined_call_operand.vmem [shape: bf16[32,64], index: 0, kind: input, shape index: {}]   ;;  %s218_s2 = inlined_call_operand.vmem [shape: f32[1,128], index: 2, kind: input, shape index: {}]   ;;  %s219_s3 = inlined_call_operand.vmem [shape: f32[16,128], index: 3, kind: output, shape index: {}]  }
   0x1   :  { %v163_v0 = vld [vmem:[%s216_s1] sm:$0xff]   ;;  %v164_v1 = vld [vmem:[%s216_s1 + $0x8] sm:$0xff]   ;;  %v165_v2 = vld [vmem:[%s216_s1 + $0x10] sm:$0xff]  }
   0x2   :  { %151 = vmatprep.subr.bf16.mxu0 %v163_v0  ;;  %v167_v3 = vld [vmem:[%s217_s0] sm:$0xff]   ;;  %v166_v4 = vld [vmem:[%s216_s1 + $0x18] sm:$0xff]   ;;  %v168_v5 = vld [vmem:[%s217_s0 + $0x8] sm:$0xff]  }
   0x3   :  { %152 = vmatpush3.bf16.msra.mxu0 %v163_v0  ;;  %159 = vmatprep.mubr.msk.bf16.mxu0 %vm61_vm0, %v167_v3  ;;  %v144_v8 = vld [vmem:[%s218_s2] ss:$0 sm:$0xff] }
   0x4   :  { %153 = vmatprep.subr.bf16.mxu0 %v164_v1 }
   0x7   :  { %154 = vmatpush3.bf16.msra.mxu0 %v164_v1 }
   0x8   :  { %155 = vmatprep.subr.bf16.mxu0 %v165_v2 }
   0xb   :  { %156 = vmatpush3.bf16.msra.mxu0 %v165_v2 }
   0xc   :  { %157 = vmatprep.subr.bf16.mxu0 %v166_v4 }
   0xf   :  { %158 = vmatpush3.bf16.msra.mxu0 %v166_v4 }
  0x12   :  { %160 = vmatmul.mubr.msk.bf16.vlgmr.msra.gmra.mrb[0].mxu0 %vm61_vm0, %v168_v5 }
  0xe5   :  { %v161_v6 = vpop.f32.mrb[0].mxu0 }
  0xe6   :  { %v102_v7 = vpop.f32.mrb[1].mxu0 }
  0xe7   :  { %v117_v9 = vmax.f32 %v102_v7, %v161_v6  ;;  %v162_v10 = vpop.f32.mrb[2].mxu0 }
  0xe8   :  { %v105_v11 = vpop.f32.mrb[3].mxu0 }
  0xe9   :  { %v126_v12 = vadd.f32 %v144_v8, %v117_v9  ;;  %v118_v13 = vmax.f32 %v105_v11, %v162_v10 }
  0xeb   :  { %v128_v14 = vmax.f32 %v126_v12, 0.0  ;;  %v127_v15 = vadd.f32 %v144_v8, %v118_v13 }
  0xed   :  { %130 = vst [vmem:[%s219_s3] sm:$0xff] %v128_v14  ;;  %v129_v16 = vmax.f32 %v127_v15, 0.0 }
  0xef   :  { %131 = vst [vmem:[%s219_s3 + $0x8] sm:$0xff] %v129_v16 }

// kernel: wdcnn_forward.9
= control target key start
LH: loop header
LB: loop body
LE: loop exit
PB: predicated region body
PF: predicated region fallthrough
CT: control target
= control target key end

     0   :  { %v270_v0 = vmov 0   ;;  %vm133_vm0 = vcmask 523264   ;;  %s372_s1 = inlined_call_operand.vmem [shape: bf16[192,128], index: 1, kind: input, shape index: {}]   ;;  %s373_s0 = inlined_call_operand.vmem [shape: bf16[32,192], index: 0, kind: input, shape index: {}]   ;;  %s374_s2 = inlined_call_operand.vmem [shape: f32[1,128], index: 2, kind: input, shape index: {}]   ;;  %s375_s3 = inlined_call_operand.vmem [shape: f32[16,128], index: 3, kind: output, shape index: {}]  }
   0x1   :  { %140 = vmatprep.subr.bf16.mxu0 %v270_v0  ;;  %227 = vmatprep.subr.bf16.mxu1 %v270_v0  ;;  %v252_v1 = vld [vmem:[%s372_s1] sm:$0xff]   ;;  %v253_v2 = vld [vmem:[%s372_s1 + $0x8] sm:$0xff]   ;;  %v254_v3 = vld [vmem:[%s372_s1 + $0x10] sm:$0xff]  }
   0x2   :  { %141 = vmatpush1.bf16.msra.mxu0 %v252_v1  ;;  %239 = vmatpush1.bf16.msra.mxu1 %v252_v1  ;;  %v255_v4 = vld [vmem:[%s372_s1 + $0x18] sm:$0xff]   ;;  %v266_v5 = vld [vmem:[%s373_s0 + $0x4] ss:$8 sps:$4 sm:$0xff]   ;;  %v258_v9 = vld [vmem:[%s372_s1 + $0x30] sm:$0xff]  }
   0x3   :  { %142 = vmatprep.subr.bf16.mxu0 %v270_v0  ;;  %228 = vmatprep.subr.bf16.mxu1 %v270_v0  ;;  %v256_v6 = vld [vmem:[%s372_s1 + $0x20] sm:$0xff]   ;;  %v269_v7 = vld [vmem:[%s373_s0 + $0x14] ss:$8 sps:$4 sm:$0xff]   ;;  %v257_v8 = vld [vmem:[%s372_s1 + $0x28] sm:$0xff]  }
   0x4   :  { %224 = vmatprep.mubr.msk.bf16.mxu0 %vm133_vm0, %v266_v5  ;;  %225 = vmatprep.mubr.msk.bf16.mxu1 %vm133_vm0, %v269_v7  ;;  %v259_v10 = vld [vmem:[%s372_s1 + $0x38] sm:$0xff]   ;;  %v260_v11 = vld [vmem:[%s372_s1 + $0x40] sm:$0xff]   ;;  %v261_v12 = vld [vmem:[%s372_s1 + $0x48] sm:$0xff]  }
   0x5   :  { %v262_v13 = vld [vmem:[%s372_s1 + $0x50] sm:$0xff]   ;;  %v263_v14 = vld [vmem:[%s372_s1 + $0x58] sm:$0xff]   ;;  %v264_v15 = vld [vmem:[%s373_s0] ss:$8 sps:$4 sm:$0xff]  }
   0x6   :  { %143 = vmatpush1.bf16.msra.mxu0 %v253_v2  ;;  %240 = vmatpush1.bf16.msra.mxu1 %v253_v2  ;;  %v267_v16 = vld [vmem:[%s373_s0 + $0x10] ss:$8 sps:$4 sm:$0xff]   ;;  %v226_v19 = vld [vmem:[%s374_s2] ss:$0 sm:$0xff] }
   0x7   :  { %144 = vmatprep.subr.bf16.mxu0 %v270_v0  ;;  %229 = vmatprep.subr.bf16.mxu1 %v270_v0 }
   0xa   :  { %145 = vmatpush1.bf16.msra.mxu0 %v254_v3  ;;  %241 = vmatpush1.bf16.msra.mxu1 %v254_v3 }
   0xb   :  { %146 = vmatprep.subr.bf16.mxu0 %v270_v0  ;;  %230 = vmatprep.subr.bf16.mxu1 %v270_v0 }
   0xe   :  { %147 = vmatpush1.bf16.msra.mxu0 %v255_v4  ;;  %242 = vmatpush1.bf16.msra.mxu1 %v255_v4 }
   0xf   :  { %148 = vmatprep.subr.bf16.mxu0 %v270_v0  ;;  %231 = vmatprep.subr.bf16.mxu1 %v270_v0 }
  0x12   :  { %149 = vmatpush1.bf16.msra.mxu0 %v256_v6  ;;  %243 = vmatpush1.bf16.msra.mxu1 %v256_v6 }
  0x13   :  { %150 = vmatprep.subr.bf16.mxu0 %v270_v0  ;;  %232 = vmatprep.subr.bf16.mxu1 %v270_v0 }
  0x16   :  { %151 = vmatpush1.bf16.msra.mxu0 %v257_v8  ;;  %244 = vmatpush1.bf16.msra.mxu1 %v257_v8 }
  0x17   :  { %152 = vmatprep.subr.bf16.mxu0 %v270_v0  ;;  %233 = vmatprep.subr.bf16.mxu1 %v270_v0 }
  0x1a   :  { %153 = vmatpush1.bf16.msra.mxu0 %v258_v9  ;;  %245 = vmatpush1.bf16.msra.mxu1 %v258_v9 }
  0x1b   :  { %154 = vmatprep.subr.bf16.mxu0 %v270_v0  ;;  %234 = vmatprep.subr.bf16.mxu1 %v270_v0 }
  0x1e   :  { %155 = vmatpush1.bf16.msra.mxu0 %v259_v10  ;;  %246 = vmatpush1.bf16.msra.mxu1 %v259_v10 }
  0x1f   :  { %156 = vmatprep.subr.bf16.mxu0 %v270_v0  ;;  %235 = vmatprep.subr.bf16.mxu1 %v270_v0 }
  0x22   :  { %157 = vmatpush1.bf16.msra.mxu0 %v260_v11  ;;  %247 = vmatpush1.bf16.msra.mxu1 %v260_v11 }
  0x23   :  { %158 = vmatprep.subr.bf16.mxu0 %v270_v0  ;;  %236 = vmatprep.subr.bf16.mxu1 %v270_v0 }
  0x26   :  { %159 = vmatpush1.bf16.msra.mxu0 %v261_v12  ;;  %248 = vmatpush1.bf16.msra.mxu1 %v261_v12 }
  0x27   :  { %160 = vmatprep.subr.bf16.mxu0 %v270_v0  ;;  %237 = vmatprep.subr.bf16.mxu1 %v270_v0 }
  0x2a   :  { %161 = vmatpush1.bf16.msra.mxu0 %v262_v13  ;;  %249 = vmatpush1.bf16.msra.mxu1 %v262_v13 }
  0x2b   :  { %162 = vmatprep.subr.bf16.mxu0 %v270_v0  ;;  %238 = vmatprep.subr.bf16.mxu1 %v270_v0 }
  0x2e   :  { %163 = vmatpush1.bf16.msra.mxu0 %v263_v14  ;;  %250 = vmatpush1.bf16.msra.mxu1 %v263_v14 }
  0x31   :  { %173 = vmatmul.mubr.bf16.vlgmr.msra.gmra.mrb[0].mxu0 %v264_v15  ;;  %181 = vmatmul.mubr.bf16.vlgmr.msra.gmra.mrb[0].mxu1 %v267_v16 }
 0x104   :  { %v174_v17 = vpop.f32.mrb[0].mxu0  ;;  %v182_v18 = vpop.f32.mrb[0].mxu1 }
 0x105   :  { %v189_v20 = vmax.f32 %v174_v17, %v182_v18  ;;  %v176_v21 = vpop.f32.mrb[1].mxu0  ;;  %v184_v22 = vpop.f32.mrb[1].mxu1 }
 0x106   :  { %v177_v23 = vpop.f32.mrb[2].mxu0  ;;  %v185_v24 = vpop.f32.mrb[2].mxu1 }
 0x107   :  { %v198_v25 = vadd.f32 %v226_v19, %v189_v20  ;;  %v190_v26 = vmax.f32 %v177_v23, %v185_v24  ;;  %v179_v27 = vpop.f32.mrb[3].mxu0  ;;  %v187_v28 = vpop.f32.mrb[3].mxu1 }
 0x109   :  { %v200_v29 = vmax.f32 %v198_v25, 0.0  ;;  %v199_v30 = vadd.f32 %v226_v19, %v190_v26 }
 0x10b   :  { %202 = vst [vmem:[%s375_s3] sm:$0xff] %v200_v29  ;;  %v201_v31 = vmax.f32 %v199_v30, 0.0 }
 0x10d   :  { %203 = vst [vmem:[%s375_s3 + $0x8] sm:$0xff] %v201_v31 }

// kernel: wdcnn_forward.11
= control target key start
LH: loop header
LB: loop body
LE: loop exit
PB: predicated region body
PF: predicated region fallthrough
CT: control target
= control target key end

     0   :  { %v161_v0 = vmov 0.0   ;;  %vm162_vm0 = vmmov 0   ;;  %vm61_vm1 = vcmask 523264   ;;  %s207_s1 = inlined_call_operand.vmem [shape: bf16[64,128], index: 1, kind: input, shape index: {}]   ;;  %s208_s0 = inlined_call_operand.vmem [shape: bf16[16,64], index: 0, kind: input, shape index: {}]   ;;  %s209_s2 = inlined_call_operand.vmem [shape: f32[1,128], index: 2, kind: input, shape index: {}]   ;;  %s210_s3 = inlined_call_operand.vmem [shape: f32[16,128], index: 3, kind: output, shape index: {}]  }
   0x1   :  { %134 = vmatprep.subr.bf16.mxu0 %v161_v0  ;;  %v148_v1 = vld [vmem:[%s207_s1] sm:$0xff]   ;;  %142 = vmatprep.mubr.msk.bf16.mxu0 %vm162_vm0, %v161_v0  ;;  %v149_v2 = vld [vmem:[%s207_s1 + $0x8] sm:$0xff]   ;;  %v150_v3 = vld [vmem:[%s207_s1 + $0x10] sm:$0xff]  }
   0x2   :  { %135 = vmatpush3.bf16.msra.mxu0 %v148_v1  ;;  %v151_v4 = vld [vmem:[%s207_s1 + $0x18] sm:$0xff]   ;;  %v152_v5 = vld [vmem:[%s208_s0] sm:$0xff]  }
   0x3   :  { %136 = vmatprep.subr.bf16.mxu0 %v161_v0  ;;  %v122_v6 = vld [vmem:[%s209_s2] ss:$0 sm:$0xff] }
   0x6   :  { %137 = vmatpush3.bf16.msra.mxu0 %v149_v2 }
   0x7   :  { %138 = vmatprep.subr.bf16.mxu0 %v161_v0 }
   0xa   :  { %139 = vmatpush3.bf16.msra.mxu0 %v150_v3 }
   0xb   :  { %140 = vmatprep.subr.bf16.mxu0 %v161_v0 }
   0xe   :  { %141 = vmatpush3.bf16.msra.mxu0 %v151_v4 }
  0x11   :  { %143 = vmatmul.mubr.msk.bf16.vlgmr.msra.gmra.mrb[0].mxu0 %vm61_vm1, %v152_v5 }
  0xe4   :  { %v99_v7 = vpop.f32.mrb[0].mxu0 }
  0xe5   :  { %v100_v8 = vadd.f32 %v122_v6, %v99_v7  ;;  %v144_v9 = vpop.f32.mrb[1].mxu0 }
  0xe6   :  { %v102_v10 = vpop.f32.mrb[2].mxu0 }
  0xe7   :  { %v106_v11 = vsub.f32 0.0, %v100_v8  ;;  %v103_v12 = vadd.f32 %v122_v6, %v102_v10  ;;  %v145_v13 = vpop.f32.mrb[3].mxu0 }
  0xe9   :  { %v108_v14 = vmul.f32 1.442695, %v106_v11  ;;  %v107_v15 = vsub.f32 0.0, %v103_v12 }
  0xeb   :  { %153 = vpow2.f32 %v108_v14  ;;  %v110_v16 = vmul.f32 1.442695, %v107_v15 }
  0xed   :  { %155 = vpow2.f32 %v110_v16 }
  0xf5   :  { %v154_v17 = vpop.eup %153 }
  0xf6   :  { %v112_v18 = vadd.f32 1.0, %v154_v17 }
  0xf7   :  { %v156_v19 = vpop.eup %155 }
  0xf8   :  { %157 = vrcp.f32 %v112_v18  ;;  %v113_v20 = vadd.f32 1.0, %v156_v19 }
  0xfa   :  { %159 = vrcp.f32 %v113_v20 }
 0x102   :  { %v158_v21 = vpop.eup %157 }
 0x103   :  { %116 = vst [vmem:[%s210_s3] sm:$0xff] %v158_v21 }
 0x104   :  { %v160_v22 = vpop.eup %159 }
 0x105   :  { %117 = vst [vmem:[%s210_s3 + $0x8] sm:$0xff] %v160_v22 }

</bundles_post_ra>
